<compile_context>
chip_gen: v5e
topology: v5e:2x2
jax: 0.10.0
libtpu: 0.0.40
codegen_flags: <defaults>
</compile_context>

<pallas_src>
import functools
import math

import jax
import jax.numpy as jnp
from jax import lax
from jax.experimental import pallas as pl
from jax.experimental.pallas import tpu as pltpu

BN_EPS = 1e-5
BN_SCALE = 1.0 / math.sqrt(1.0 + BN_EPS)   # eval-mode BN with freshly-init stats


# ----------------------------------------------------------------------------
# In-kernel building blocks (traced inside the Pallas kernel, pure 2-D ops)
# ----------------------------------------------------------------------------
def _gcn_2d(x, att_eff, w, b):
    """GraphConvolution on one batch element. x:(N,Fin) -> (N,Fout)."""
    support = jnp.dot(x, w, preferred_element_type=jnp.float32)           # MXU
    # cosine-similarity adjacency, divide-free (== mup / (|x||x|^T))
    inv_norm = lax.rsqrt(jnp.sum(x * x, axis=-1, keepdims=True))          # EUP
    xn = x * inv_norm
    w_cos = lax.dot_general(xn, xn, (((1,), (1,)), ((), ())),
                            preferred_element_type=jnp.float32)           # (N,N)
    adj = att_eff * w_cos
    return jnp.dot(adj, support, preferred_element_type=jnp.float32) + b  # (N,Fout)


def _gc_block_2d(x, att1, w1, b1, att2, w2, b2):
    """GC_Block on one batch element (eval-mode BN / Dropout)."""
    y = _gcn_2d(x, att1, w1, b1)
    y = jnp.maximum(y * BN_SCALE, 0.0)        # bn1 + ReLU (dropout = identity)
    y = _gcn_2d(y + x, att2, w2, b2)
    y = jnp.maximum(y * BN_SCALE, 0.0) + y    # bn2 + ReLU, then + y2
    return y + x


# ----------------------------------------------------------------------------
# Fused whole-network kernel: one grid step == one branch (t or s)
# ----------------------------------------------------------------------------
def _net_branch_kernel(x_ref, att1_ref, w1_ref, b1_ref, attb_ref, wb_ref, bb_ref,
                       out_wT_ref, out_b_ref, proj_ref, stack_ref, *, num_stage):
    # Kernel-visible shapes (branch dim squeezed away by the BlockSpecs):
    #   x_ref:(B,N,Fin)  att1_ref:(N,N)  w1_ref:(Fin,H)  b1_ref:(1,H)
    #   attb_ref:(2*ns,N,N)  wb_ref:(2*ns,H,H)  bb_ref:(2*ns,1,H)
    #   out_wT_ref:(H,O)  out_b_ref:(1,O)
    #   proj_ref:(B,N,O)  stack_ref:((ns+1)*B,N,H)
    B = x_ref.shape[0]
    att1 = att1_ref[...]
    w1 = w1_ref[...]
    b1 = b1_ref[...]
    w_out = out_wT_ref[...]
    b_out = out_b_ref[...]

    for b in range(B):                                     # tiny static batch -> unrolled
        y = _gcn_2d(x_ref[b].astype(jnp.float32), att1, w1, b1)
        stack_ref[b] = y.astype(stack_ref.dtype)           # *_out0[0]
        for stg in range(num_stage):
            y = _gc_block_2d(
                y,
                attb_ref[2 * stg], wb_ref[2 * stg], bb_ref[2 * stg],
                attb_ref[2 * stg + 1], wb_ref[2 * stg + 1], bb_ref[2 * stg + 1])
            stack_ref[(stg + 1) * B + b] = y.astype(stack_ref.dtype)
        # shared output Linear (same per-node as the PyTorch loop over node_n)
        proj_ref[b] = (jnp.dot(y, w_out, preferred_element_type=jnp.float32)
                       + b_out).astype(proj_ref.dtype)


def net_forward(x, fused, num_stage):
    """Fused Net.forward -> (out, out_t, t_out0, s_out0), matching the PyTorch module."""
    B, N, Fin = x.shape
    H = fused["w1"].shape[-1]
    O = fused["out_wT"].shape[-1]
    ns = num_stage

    kernel = functools.partial(_net_branch_kernel, num_stage=ns)
    proj, stacks = pl.pallas_call(
        kernel,
        grid=(2,),  # branch axis: 0 = temporal (mask == []), 1 = spatial (att * mask)
        in_specs=[
            pl.BlockSpec((B, N, Fin), lambda br: (0, 0, 0)),
            pl.BlockSpec((None, N, N), lambda br: (br, 0, 0)),
            pl.BlockSpec((None, Fin, H), lambda br: (br, 0, 0)),
            pl.BlockSpec((None, 1, H), lambda br: (br, 0, 0)),
            pl.BlockSpec((None, 2 * ns, N, N), lambda br: (br, 0, 0, 0)),
            pl.BlockSpec((None, 2 * ns, H, H), lambda br: (br, 0, 0, 0)),
            pl.BlockSpec((None, 2 * ns, 1, H), lambda br: (br, 0, 0, 0)),
            pl.BlockSpec((H, O), lambda br: (0, 0)),
            pl.BlockSpec((1, O), lambda br: (0, 0)),
        ],
        out_specs=[
            pl.BlockSpec((None, B, N, O), lambda br: (br, 0, 0, 0)),
            pl.BlockSpec((None, (ns + 1) * B, N, H), lambda br: (br, 0, 0, 0)),
        ],
        out_shape=[
            jax.ShapeDtypeStruct((2, B, N, O), jnp.float32),
            jax.ShapeDtypeStruct((2, (ns + 1) * B, N, H), jnp.float32),
        ],
        compiler_params=pltpu.CompilerParams(
            dimension_semantics=("parallel",)),   # v7x: t / s branch per TensorCore
    )(x, fused["att1"], fused["w1"], fused["b1"],
      fused["attb"], fused["wb"], fused["bb"],
      fused["out_wT"], fused["out_b"])

    out_t = proj[0]                       # temporal branch projection
    out = proj[1]                         # spatial branch projection
    t_stack = stacks[0].reshape(ns + 1, B, N, H)
    s_stack = stacks[1].reshape(ns + 1, B, N, H)
    t_out0 = [t_stack[i] for i in range(ns + 1)]
    s_out0 = [s_stack[i] for i in range(ns + 1)]
    return out, out_t, t_out0, s_out0


# ----------------------------------------------------------------------------
# One-time parameter preparation (outside the per-forward hot path)
# ----------------------------------------------------------------------------
def prepare_fused_params(params, mask, num_stage):
    """Pre-multiply att by the static mask (spatial branch), stack per-branch /
    per-layer parameters along a leading axis of size 2, pre-transpose out_w."""
    def branch(first, blocks, att_mask):
        eff = (lambda a: a) if att_mask is None else (
            lambda a: (a * att_mask).astype(jnp.float32))
        order = [(i, gc) for i in range(num_stage) for gc in ("gc1", "gc2")]
        return dict(
            att1=eff(first["att"]),
            w1=first["weight"],
            b1=first["bias"].reshape(1, -1),
            attb=jnp.stack([eff(blocks[i][gc]["att"]) for i, gc in order]),
            wb=jnp.stack([blocks[i][gc]["weight"] for i, gc in order]),
            bb=jnp.stack([blocks[i][gc]["bias"].reshape(1, -1) for i, gc in order]),
        )

    t = branch(params["gcn_t1"], params["gcn_t"], None)    # temporal: mask == []
    s = branch(params["gcn_s1"], params["gcn_s"], mask)    # spatial: att * mask
    fused = {k: jnp.stack([t[k], s[k]]) for k in t}
    fused["out_wT"] = jnp.transpose(params["out_w"])        # (H, O)
    fused["out_b"] = params["out_b"].reshape(1, -1)         # (1, O)
    return fused


# ----------------------------------------------------------------------------
# Deterministic parameter initialization (mirrors shapes in __init__)
# ----------------------------------------------------------------------------
def init_graph_conv(key, in_f, out_f, node_n):
    stdv = 1.0 / math.sqrt(out_f)
    k1, k2, k3 = jax.random.split(key, 3)
    return dict(
        weight=jax.random.uniform(k1, (in_f, out_f), jnp.float32, -stdv, stdv),
        att=jax.random.uniform(k2, (node_n, node_n), jnp.float32, -stdv, stdv),
        bias=jax.random.uniform(k3, (out_f,), jnp.float32, -stdv, stdv),
    )


def init_gc_block(key, hidden, node_n):
    k1, k2 = jax.random.split(key)
    return dict(gc1=init_graph_conv(k1, hidden, hidden, node_n),
                gc2=init_graph_conv(k2, hidden, hidden, node_n))


def init_net(key, n_feature, n_output, hidden, node_n, num_stage):
    keys = jax.random.split(key, 3 + 2 * num_stage)
    params = dict(
        gcn_t1=init_graph_conv(keys[0], n_feature, hidden, node_n),
        gcn_s1=init_graph_conv(keys[1], n_feature, hidden, node_n),
        gcn_t=[init_gc_block(keys[2 + i], hidden, node_n) for i in range(num_stage)],
        gcn_s=[init_gc_block(keys[2 + num_stage + i], hidden, node_n)
               for i in range(num_stage)],
    )
    bound = 1.0 / math.sqrt(hidden)
    kw, kb = jax.random.split(keys[2 + 2 * num_stage])
    params["out_w"] = jax.random.uniform(kw, (n_output, hidden), jnp.float32,
                                         -bound, bound)
    params["out_b"] = jax.random.uniform(kb, (n_output,), jnp.float32, -bound, bound)
    return params


# ----------------------------------------------------------------------------
if __name__ == "__main__":
    B, NODE_N, N_FEATURE, HIDDEN, N_OUTPUT, NUM_STAGE = 2, 10, 16, 32, 16, 1

    key = jax.random.PRNGKey(0)
    kx, km, kp = jax.random.split(key, 3)
    x = jax.random.normal(kx, (B, NODE_N, N_FEATURE), jnp.float32)
    mask = (jax.random.uniform(km, (NODE_N, NODE_N)) > 0.3).astype(jnp.float32)
    params = init_net(kp, N_FEATURE, N_OUTPUT, HIDDEN, NODE_N, NUM_STAGE)

    fused = prepare_fused_params(params, mask, NUM_STAGE)   # one-time, off hot path
    forward = jax.jit(lambda xx, ff: net_forward(xx, ff, NUM_STAGE))

    out, out_t, t_out0, s_out0 = forward(x, fused)
    jax.block_until_ready((out, out_t, t_out0, s_out0))

    assert out.shape == (B, NODE_N, N_OUTPUT)
    assert out_t.shape == (B, NODE_N, N_OUTPUT)
    assert len(t_out0) == NUM_STAGE + 1 and len(s_out0) == NUM_STAGE + 1
    assert all(a.shape == (B, NODE_N, HIDDEN) for a in t_out0 + s_out0)
    print("KERNEL_OK")
</pallas_src>

<mosaic_0001>
module attributes {stable_mosaic.version = 11 : i64} {
  func.func @_net_branch_kernel(%arg0: i32, %arg1: memref<2x10x16xf32, #tpu.memory_space<vmem>>, %arg2: memref<1x10x10xf32, #tpu.memory_space<vmem>>, %arg3: memref<1x16x32xf32, #tpu.memory_space<vmem>>, %arg4: memref<1x1x32xf32, #tpu.memory_space<vmem>>, %arg5: memref<1x2x10x10xf32, #tpu.memory_space<vmem>>, %arg6: memref<1x2x32x32xf32, #tpu.memory_space<vmem>>, %arg7: memref<1x2x1x32xf32, #tpu.memory_space<vmem>>, %arg8: memref<32x16xf32, #tpu.memory_space<vmem>>, %arg9: memref<1x16xf32, #tpu.memory_space<vmem>>, %arg10: memref<1x2x10x16xf32, #tpu.memory_space<vmem>>, %arg11: memref<1x4x10x32xf32, #tpu.memory_space<vmem>>) attributes {dimension_semantics = [#tpu.dimension_semantics<parallel>], iteration_bounds = array<i64: 2>, scalar_prefetch = 0 : i64, scratch_operands = 0 : i64, tpu.core_type = #tpu.core_type<tc>, window_params = [{pipeline_mode = #tpu.pipeline_mode<synchronous>, transform_indices = @transform_0, window_bounds = array<i64: 2, 10, 16>}, {transform_indices = @transform_1, window_bounds = array<i64: 1, 10, 10>}, {transform_indices = @transform_2, window_bounds = array<i64: 1, 16, 32>}, {transform_indices = @transform_3, window_bounds = array<i64: 1, 1, 32>}, {transform_indices = @transform_4, window_bounds = array<i64: 1, 2, 10, 10>}, {transform_indices = @transform_5, window_bounds = array<i64: 1, 2, 32, 32>}, {transform_indices = @transform_6, window_bounds = array<i64: 1, 2, 1, 32>}, {pipeline_mode = #tpu.pipeline_mode<synchronous>, transform_indices = @transform_7, window_bounds = array<i64: 32, 16>}, {pipeline_mode = #tpu.pipeline_mode<synchronous>, transform_indices = @transform_8, window_bounds = array<i64: 1, 16>}, {transform_indices = @transform_9, window_bounds = array<i64: 1, 2, 10, 16>}, {transform_indices = @transform_10, window_bounds = array<i64: 1, 4, 10, 32>}]} {
    %c0 = arith.constant 0 : index
    %c0_0 = arith.constant 0 : index
    %c0_1 = arith.constant 0 : index
    %0 = vector.load %arg2[%c0, %c0_0, %c0_1] : memref<1x10x10xf32, #tpu.memory_space<vmem>>, vector<1x10x10xf32>
    %1 = vector.shape_cast %0 : vector<1x10x10xf32> to vector<10x10xf32>
    %c0_2 = arith.constant 0 : index
    %c0_3 = arith.constant 0 : index
    %c0_4 = arith.constant 0 : index
    %2 = vector.load %arg3[%c0_2, %c0_3, %c0_4] : memref<1x16x32xf32, #tpu.memory_space<vmem>>, vector<1x16x32xf32>
    %3 = vector.shape_cast %2 : vector<1x16x32xf32> to vector<16x32xf32>
    %c0_5 = arith.constant 0 : index
    %c0_6 = arith.constant 0 : index
    %c0_7 = arith.constant 0 : index
    %4 = vector.load %arg4[%c0_5, %c0_6, %c0_7] : memref<1x1x32xf32, #tpu.memory_space<vmem>>, vector<1x1x32xf32>
    %5 = vector.shape_cast %4 : vector<1x1x32xf32> to vector<1x32xf32>
    %c0_8 = arith.constant 0 : index
    %c0_9 = arith.constant 0 : index
    %6 = vector.load %arg8[%c0_8, %c0_9] : memref<32x16xf32, #tpu.memory_space<vmem>>, vector<32x16xf32>
    %c0_10 = arith.constant 0 : index
    %c0_11 = arith.constant 0 : index
    %7 = vector.load %arg9[%c0_10, %c0_11] : memref<1x16xf32, #tpu.memory_space<vmem>>, vector<1x16xf32>
    %c0_12 = arith.constant 0 : index
    %c0_13 = arith.constant 0 : index
    %c0_14 = arith.constant 0 : index
    %8 = vector.load %arg1[%c0_12, %c0_13, %c0_14] : memref<2x10x16xf32, #tpu.memory_space<vmem>>, vector<1x10x16xf32>
    %9 = vector.shape_cast %8 : vector<1x10x16xf32> to vector<10x16xf32>
    %cst = arith.constant dense<0.000000e+00> : vector<10x32xf32>
    %10 = tpu.matmul %9, %3, %cst {dimension_numbers = #tpu.dot_dimension_numbers<[1], [0], [0], [1], [0, 0, 1, 1], [], []>} : vector<10x16xf32>, vector<16x32xf32>, vector<10x32xf32> -> vector<10x32xf32>
    %11 = arith.mulf %9, %9 : vector<10x16xf32>
    %cst_15 = arith.constant dense<0.000000e+00> : vector<10xf32>
    %12 = vector.multi_reduction <add>, %11, %cst_15 [1] : vector<10x16xf32> to vector<10xf32>
    %13 = vector.shape_cast %12 : vector<10xf32> to vector<10x1xf32>
    %14 = math.rsqrt %13 : vector<10x1xf32>
    %15 = vector.broadcast %14 : vector<10x1xf32> to vector<10x16xf32>
    %16 = arith.mulf %9, %15 : vector<10x16xf32>
    %cst_16 = arith.constant dense<0.000000e+00> : vector<10x10xf32>
    %17 = tpu.matmul %16, %16, %cst_16 {dimension_numbers = #tpu.dot_dimension_numbers<[1], [1], [0], [0], [0, 0, 1, 0], [], []>} : vector<10x16xf32>, vector<10x16xf32>, vector<10x10xf32> -> vector<10x10xf32>
    %18 = arith.mulf %1, %17 : vector<10x10xf32>
    %cst_17 = arith.constant dense<0.000000e+00> : vector<10x32xf32>
    %19 = tpu.matmul %18, %10, %cst_17 {dimension_numbers = #tpu.dot_dimension_numbers<[1], [0], [0], [1], [0, 0, 1, 1], [], []>} : vector<10x10xf32>, vector<10x32xf32>, vector<10x32xf32> -> vector<10x32xf32>
    %20 = vector.broadcast %5 : vector<1x32xf32> to vector<10x32xf32>
    %21 = arith.addf %19, %20 : vector<10x32xf32>
    %c0_18 = arith.constant 0 : index
    %c0_19 = arith.constant 0 : index
    %c0_20 = arith.constant 0 : index
    %c0_21 = arith.constant 0 : index
    %22 = vector.load %arg11[%c0_18, %c0_19, %c0_20, %c0_21] : memref<1x4x10x32xf32, #tpu.memory_space<vmem>>, vector<1x1x10x32xf32>
    %23 = vector.shape_cast %22 : vector<1x1x10x32xf32> to vector<10x32xf32>
    %24 = vector.shape_cast %21 : vector<10x32xf32> to vector<1x1x10x32xf32>
    tpu.vector_store %arg11[%c0_18, %c0_19, %c0_20, %c0_21], %24 {strides = array<i32>} : memref<1x4x10x32xf32, #tpu.memory_space<vmem>>, vector<1x1x10x32xf32>,
    %c0_22 = arith.constant 0 : index
    %c0_23 = arith.constant 0 : index
    %c0_24 = arith.constant 0 : index
    %c0_25 = arith.constant 0 : index
    %25 = vector.load %arg5[%c0_22, %c0_23, %c0_24, %c0_25] : memref<1x2x10x10xf32, #tpu.memory_space<vmem>>, vector<1x1x10x10xf32>
    %26 = vector.shape_cast %25 : vector<1x1x10x10xf32> to vector<10x10xf32>
    %c0_26 = arith.constant 0 : index
    %c0_27 = arith.constant 0 : index
    %c0_28 = arith.constant 0 : index
    %c0_29 = arith.constant 0 : index
    %27 = vector.load %arg6[%c0_26, %c0_27, %c0_28, %c0_29] : memref<1x2x32x32xf32, #tpu.memory_space<vmem>>, vector<1x1x32x32xf32>
    %28 = vector.shape_cast %27 : vector<1x1x32x32xf32> to vector<32x32xf32>
    %c0_30 = arith.constant 0 : index
    %c0_31 = arith.constant 0 : index
    %c0_32 = arith.constant 0 : index
    %c0_33 = arith.constant 0 : index
    %29 = vector.load %arg7[%c0_30, %c0_31, %c0_32, %c0_33] : memref<1x2x1x32xf32, #tpu.memory_space<vmem>>, vector<1x1x1x32xf32>
    %30 = vector.shape_cast %29 : vector<1x1x1x32xf32> to vector<1x32xf32>
    %c0_34 = arith.constant 0 : index
    %c1 = arith.constant 1 : index
    %c0_35 = arith.constant 0 : index
    %c0_36 = arith.constant 0 : index
    %31 = vector.load %arg5[%c0_34, %c1, %c0_35, %c0_36] : memref<1x2x10x10xf32, #tpu.memory_space<vmem>>, vector<1x1x10x10xf32>
    %32 = vector.shape_cast %31 : vector<1x1x10x10xf32> to vector<10x10xf32>
    %c0_37 = arith.constant 0 : index
    %c1_38 = arith.constant 1 : index
    %c0_39 = arith.constant 0 : index
    %c0_40 = arith.constant 0 : index
    %33 = vector.load %arg6[%c0_37, %c1_38, %c0_39, %c0_40] : memref<1x2x32x32xf32, #tpu.memory_space<vmem>>, vector<1x1x32x32xf32>
    %34 = vector.shape_cast %33 : vector<1x1x32x32xf32> to vector<32x32xf32>
    %c0_41 = arith.constant 0 : index
    %c1_42 = arith.constant 1 : index
    %c0_43 = arith.constant 0 : index
    %c0_44 = arith.constant 0 : index
    %35 = vector.load %arg7[%c0_41, %c1_42, %c0_43, %c0_44] : memref<1x2x1x32xf32, #tpu.memory_space<vmem>>, vector<1x1x1x32xf32>
    %36 = vector.shape_cast %35 : vector<1x1x1x32xf32> to vector<1x32xf32>
    %cst_45 = arith.constant dense<0.000000e+00> : vector<10x32xf32>
    %37 = tpu.matmul %21, %28, %cst_45 {dimension_numbers = #tpu.dot_dimension_numbers<[1], [0], [0], [1], [0, 0, 1, 1], [], []>} : vector<10x32xf32>, vector<32x32xf32>, vector<10x32xf32> -> vector<10x32xf32>
    %38 = arith.mulf %21, %21 : vector<10x32xf32>
    %cst_46 = arith.constant dense<0.000000e+00> : vector<10xf32>
    %39 = vector.multi_reduction <add>, %38, %cst_46 [1] : vector<10x32xf32> to vector<10xf32>
    %40 = vector.shape_cast %39 : vector<10xf32> to vector<10x1xf32>
    %41 = math.rsqrt %40 : vector<10x1xf32>
    %42 = vector.broadcast %41 : vector<10x1xf32> to vector<10x32xf32>
    %43 = arith.mulf %21, %42 : vector<10x32xf32>
    %cst_47 = arith.constant dense<0.000000e+00> : vector<10x10xf32>
    %44 = tpu.matmul %43, %43, %cst_47 {dimension_numbers = #tpu.dot_dimension_numbers<[1], [1], [0], [0], [0, 0, 1, 0], [], []>} : vector<10x32xf32>, vector<10x32xf32>, vector<10x10xf32> -> vector<10x10xf32>
    %45 = arith.mulf %26, %44 : vector<10x10xf32>
    %cst_48 = arith.constant dense<0.000000e+00> : vector<10x32xf32>
    %46 = tpu.matmul %45, %37, %cst_48 {dimension_numbers = #tpu.dot_dimension_numbers<[1], [0], [0], [1], [0, 0, 1, 1], [], []>} : vector<10x10xf32>, vector<10x32xf32>, vector<10x32xf32> -> vector<10x32xf32>
    %47 = vector.broadcast %30 : vector<1x32xf32> to vector<10x32xf32>
    %48 = arith.addf %46, %47 : vector<10x32xf32>
    %cst_49 = arith.constant 0.999994993 : f32
    %49 = vector.broadcast %cst_49 : f32 to vector<10x32xf32>
    %50 = arith.mulf %48, %49 : vector<10x32xf32>
    %cst_50 = arith.constant 0.000000e+00 : f32
    %51 = vector.broadcast %cst_50 : f32 to vector<10x32xf32>
    %52 = arith.maximumf %50, %51 : vector<10x32xf32>
    %53 = arith.addf %52, %21 : vector<10x32xf32>
    %cst_51 = arith.constant dense<0.000000e+00> : vector<10x32xf32>
    %54 = tpu.matmul %53, %34, %cst_51 {dimension_numbers = #tpu.dot_dimension_numbers<[1], [0], [0], [1], [0, 0, 1, 1], [], []>} : vector<10x32xf32>, vector<32x32xf32>, vector<10x32xf32> -> vector<10x32xf32>
    %55 = arith.mulf %53, %53 : vector<10x32xf32>
    %cst_52 = arith.constant dense<0.000000e+00> : vector<10xf32>
    %56 = vector.multi_reduction <add>, %55, %cst_52 [1] : vector<10x32xf32> to vector<10xf32>
    %57 = vector.shape_cast %56 : vector<10xf32> to vector<10x1xf32>
    %58 = math.rsqrt %57 : vector<10x1xf32>
    %59 = vector.broadcast %58 : vector<10x1xf32> to vector<10x32xf32>
    %60 = arith.mulf %53, %59 : vector<10x32xf32>
    %cst_53 = arith.constant dense<0.000000e+00> : vector<10x10xf32>
    %61 = tpu.matmul %60, %60, %cst_53 {dimension_numbers = #tpu.dot_dimension_numbers<[1], [1], [0], [0], [0, 0, 1, 0], [], []>} : vector<10x32xf32>, vector<10x32xf32>, vector<10x10xf32> -> vector<10x10xf32>
    %62 = arith.mulf %32, %61 : vector<10x10xf32>
    %cst_54 = arith.constant dense<0.000000e+00> : vector<10x32xf32>
    %63 = tpu.matmul %62, %54, %cst_54 {dimension_numbers = #tpu.dot_dimension_numbers<[1], [0], [0], [1], [0, 0, 1, 1], [], []>} : vector<10x10xf32>, vector<10x32xf32>, vector<10x32xf32> -> vector<10x32xf32>
    %64 = vector.broadcast %36 : vector<1x32xf32> to vector<10x32xf32>
    %65 = arith.addf %63, %64 : vector<10x32xf32>
    %cst_55 = arith.constant 0.999994993 : f32
    %66 = vector.broadcast %cst_55 : f32 to vector<10x32xf32>
    %67 = arith.mulf %65, %66 : vector<10x32xf32>
    %cst_56 = arith.constant 0.000000e+00 : f32
    %68 = vector.broadcast %cst_56 : f32 to vector<10x32xf32>
    %69 = arith.maximumf %67, %68 : vector<10x32xf32>
    %70 = arith.addf %69, %65 : vector<10x32xf32>
    %71 = arith.addf %70, %21 : vector<10x32xf32>
    %c0_57 = arith.constant 0 : index
    %c2 = arith.constant 2 : index
    %c0_58 = arith.constant 0 : index
    %c0_59 = arith.constant 0 : index
    %72 = vector.load %arg11[%c0_57, %c2, %c0_58, %c0_59] : memref<1x4x10x32xf32, #tpu.memory_space<vmem>>, vector<1x1x10x32xf32>
    %73 = vector.shape_cast %72 : vector<1x1x10x32xf32> to vector<10x32xf32>
    %74 = vector.shape_cast %71 : vector<10x32xf32> to vector<1x1x10x32xf32>
    tpu.vector_store %arg11[%c0_57, %c2, %c0_58, %c0_59], %74 {strides = array<i32>} : memref<1x4x10x32xf32, #tpu.memory_space<vmem>>, vector<1x1x10x32xf32>,
    %cst_60 = arith.constant dense<0.000000e+00> : vector<10x16xf32>
    %75 = tpu.matmul %71, %6, %cst_60 {dimension_numbers = #tpu.dot_dimension_numbers<[1], [0], [0], [1], [0, 0, 1, 1], [], []>} : vector<10x32xf32>, vector<32x16xf32>, vector<10x16xf32> -> vector<10x16xf32>
    %76 = vector.broadcast %7 : vector<1x16xf32> to vector<10x16xf32>
    %77 = arith.addf %75, %76 : vector<10x16xf32>
    %c0_61 = arith.constant 0 : index
    %c0_62 = arith.constant 0 : index
    %c0_63 = arith.constant 0 : index
    %c0_64 = arith.constant 0 : index
    %78 = vector.load %arg10[%c0_61, %c0_62, %c0_63, %c0_64] : memref<1x2x10x16xf32, #tpu.memory_space<vmem>>, vector<1x1x10x16xf32>
    %79 = vector.shape_cast %78 : vector<1x1x10x16xf32> to vector<10x16xf32>
    %80 = vector.shape_cast %77 : vector<10x16xf32> to vector<1x1x10x16xf32>
    tpu.vector_store %arg10[%c0_61, %c0_62, %c0_63, %c0_64], %80 {strides = array<i32>} : memref<1x2x10x16xf32, #tpu.memory_space<vmem>>, vector<1x1x10x16xf32>,
    %c1_65 = arith.constant 1 : index
    %c0_66 = arith.constant 0 : index
    %c0_67 = arith.constant 0 : index
    %81 = vector.load %arg1[%c1_65, %c0_66, %c0_67] : memref<2x10x16xf32, #tpu.memory_space<vmem>>, vector<1x10x16xf32>
    %82 = vector.shape_cast %81 : vector<1x10x16xf32> to vector<10x16xf32>
    %cst_68 = arith.constant dense<0.000000e+00> : vector<10x32xf32>
    %83 = tpu.matmul %82, %3, %cst_68 {dimension_numbers = #tpu.dot_dimension_numbers<[1], [0], [0], [1], [0, 0, 1, 1], [], []>} : vector<10x16xf32>, vector<16x32xf32>, vector<10x32xf32> -> vector<10x32xf32>
    %84 = arith.mulf %82, %82 : vector<10x16xf32>
    %cst_69 = arith.constant dense<0.000000e+00> : vector<10xf32>
    %85 = vector.multi_reduction <add>, %84, %cst_69 [1] : vector<10x16xf32> to vector<10xf32>
    %86 = vector.shape_cast %85 : vector<10xf32> to vector<10x1xf32>
    %87 = math.rsqrt %86 : vector<10x1xf32>
    %88 = vector.broadcast %87 : vector<10x1xf32> to vector<10x16xf32>
    %89 = arith.mulf %82, %88 : vector<10x16xf32>
    %cst_70 = arith.constant dense<0.000000e+00> : vector<10x10xf32>
    %90 = tpu.matmul %89, %89, %cst_70 {dimension_numbers = #tpu.dot_dimension_numbers<[1], [1], [0], [0], [0, 0, 1, 0], [], []>} : vector<10x16xf32>, vector<10x16xf32>, vector<10x10xf32> -> vector<10x10xf32>
    %91 = arith.mulf %1, %90 : vector<10x10xf32>
    %cst_71 = arith.constant dense<0.000000e+00> : vector<10x32xf32>
    %92 = tpu.matmul %91, %83, %cst_71 {dimension_numbers = #tpu.dot_dimension_numbers<[1], [0], [0], [1], [0, 0, 1, 1], [], []>} : vector<10x10xf32>, vector<10x32xf32>, vector<10x32xf32> -> vector<10x32xf32>
    %93 = vector.broadcast %5 : vector<1x32xf32> to vector<10x32xf32>
    %94 = arith.addf %92, %93 : vector<10x32xf32>
    %c0_72 = arith.constant 0 : index
    %c1_73 = arith.constant 1 : index
    %c0_74 = arith.constant 0 : index
    %c0_75 = arith.constant 0 : index
    %95 = vector.load %arg11[%c0_72, %c1_73, %c0_74, %c0_75] : memref<1x4x10x32xf32, #tpu.memory_space<vmem>>, vector<1x1x10x32xf32>
    %96 = vector.shape_cast %95 : vector<1x1x10x32xf32> to vector<10x32xf32>
    %97 = vector.shape_cast %94 : vector<10x32xf32> to vector<1x1x10x32xf32>
    tpu.vector_store %arg11[%c0_72, %c1_73, %c0_74, %c0_75], %97 {strides = array<i32>} : memref<1x4x10x32xf32, #tpu.memory_space<vmem>>, vector<1x1x10x32xf32>,
    %c0_76 = arith.constant 0 : index
    %c0_77 = arith.constant 0 : index
    %c0_78 = arith.constant 0 : index
    %c0_79 = arith.constant 0 : index
    %98 = vector.load %arg5[%c0_76, %c0_77, %c0_78, %c0_79] : memref<1x2x10x10xf32, #tpu.memory_space<vmem>>, vector<1x1x10x10xf32>
    %99 = vector.shape_cast %98 : vector<1x1x10x10xf32> to vector<10x10xf32>
    %c0_80 = arith.constant 0 : index
    %c0_81 = arith.constant 0 : index
    %c0_82 = arith.constant 0 : index
    %c0_83 = arith.constant 0 : index
    %100 = vector.load %arg6[%c0_80, %c0_81, %c0_82, %c0_83] : memref<1x2x32x32xf32, #tpu.memory_space<vmem>>, vector<1x1x32x32xf32>
    %101 = vector.shape_cast %100 : vector<1x1x32x32xf32> to vector<32x32xf32>
    %c0_84 = arith.constant 0 : index
    %c0_85 = arith.constant 0 : index
    %c0_86 = arith.constant 0 : index
    %c0_87 = arith.constant 0 : index
    %102 = vector.load %arg7[%c0_84, %c0_85, %c0_86, %c0_87] : memref<1x2x1x32xf32, #tpu.memory_space<vmem>>, vector<1x1x1x32xf32>
    %103 = vector.shape_cast %102 : vector<1x1x1x32xf32> to vector<1x32xf32>
    %c0_88 = arith.constant 0 : index
    %c1_89 = arith.constant 1 : index
    %c0_90 = arith.constant 0 : index
    %c0_91 = arith.constant 0 : index
    %104 = vector.load %arg5[%c0_88, %c1_89, %c0_90, %c0_91] : memref<1x2x10x10xf32, #tpu.memory_space<vmem>>, vector<1x1x10x10xf32>
    %105 = vector.shape_cast %104 : vector<1x1x10x10xf32> to vector<10x10xf32>
    %c0_92 = arith.constant 0 : index
    %c1_93 = arith.constant 1 : index
    %c0_94 = arith.constant 0 : index
    %c0_95 = arith.constant 0 : index
    %106 = vector.load %arg6[%c0_92, %c1_93, %c0_94, %c0_95] : memref<1x2x32x32xf32, #tpu.memory_space<vmem>>, vector<1x1x32x32xf32>
    %107 = vector.shape_cast %106 : vector<1x1x32x32xf32> to vector<32x32xf32>
    %c0_96 = arith.constant 0 : index
    %c1_97 = arith.constant 1 : index
    %c0_98 = arith.constant 0 : index
    %c0_99 = arith.constant 0 : index
    %108 = vector.load %arg7[%c0_96, %c1_97, %c0_98, %c0_99] : memref<1x2x1x32xf32, #tpu.memory_space<vmem>>, vector<1x1x1x32xf32>
    %109 = vector.shape_cast %108 : vector<1x1x1x32xf32> to vector<1x32xf32>
    %cst_100 = arith.constant dense<0.000000e+00> : vector<10x32xf32>
    %110 = tpu.matmul %94, %101, %cst_100 {dimension_numbers = #tpu.dot_dimension_numbers<[1], [0], [0], [1], [0, 0, 1, 1], [], []>} : vector<10x32xf32>, vector<32x32xf32>, vector<10x32xf32> -> vector<10x32xf32>
    %111 = arith.mulf %94, %94 : vector<10x32xf32>
    %cst_101 = arith.constant dense<0.000000e+00> : vector<10xf32>
    %112 = vector.multi_reduction <add>, %111, %cst_101 [1] : vector<10x32xf32> to vector<10xf32>
    %113 = vector.shape_cast %112 : vector<10xf32> to vector<10x1xf32>
    %114 = math.rsqrt %113 : vector<10x1xf32>
    %115 = vector.broadcast %114 : vector<10x1xf32> to vector<10x32xf32>
    %116 = arith.mulf %94, %115 : vector<10x32xf32>
    %cst_102 = arith.constant dense<0.000000e+00> : vector<10x10xf32>
    %117 = tpu.matmul %116, %116, %cst_102 {dimension_numbers = #tpu.dot_dimension_numbers<[1], [1], [0], [0], [0, 0, 1, 0], [], []>} : vector<10x32xf32>, vector<10x32xf32>, vector<10x10xf32> -> vector<10x10xf32>
    %118 = arith.mulf %99, %117 : vector<10x10xf32>
    %cst_103 = arith.constant dense<0.000000e+00> : vector<10x32xf32>
    %119 = tpu.matmul %118, %110, %cst_103 {dimension_numbers = #tpu.dot_dimension_numbers<[1], [0], [0], [1], [0, 0, 1, 1], [], []>} : vector<10x10xf32>, vector<10x32xf32>, vector<10x32xf32> -> vector<10x32xf32>
    %120 = vector.broadcast %103 : vector<1x32xf32> to vector<10x32xf32>
    %121 = arith.addf %119, %120 : vector<10x32xf32>
    %cst_104 = arith.constant 0.999994993 : f32
    %122 = vector.broadcast %cst_104 : f32 to vector<10x32xf32>
    %123 = arith.mulf %121, %122 : vector<10x32xf32>
    %cst_105 = arith.constant 0.000000e+00 : f32
    %124 = vector.broadcast %cst_105 : f32 to vector<10x32xf32>
    %125 = arith.maximumf %123, %124 : vector<10x32xf32>
    %126 = arith.addf %125, %94 : vector<10x32xf32>
    %cst_106 = arith.constant dense<0.000000e+00> : vector<10x32xf32>
    %127 = tpu.matmul %126, %107, %cst_106 {dimension_numbers = #tpu.dot_dimension_numbers<[1], [0], [0], [1], [0, 0, 1, 1], [], []>} : vector<10x32xf32>, vector<32x32xf32>, vector<10x32xf32> -> vector<10x32xf32>
    %128 = arith.mulf %126, %126 : vector<10x32xf32>
    %cst_107 = arith.constant dense<0.000000e+00> : vector<10xf32>
    %129 = vector.multi_reduction <add>, %128, %cst_107 [1] : vector<10x32xf32> to vector<10xf32>
    %130 = vector.shape_cast %129 : vector<10xf32> to vector<10x1xf32>
    %131 = math.rsqrt %130 : vector<10x1xf32>
    %132 = vector.broadcast %131 : vector<10x1xf32> to vector<10x32xf32>
    %133 = arith.mulf %126, %132 : vector<10x32xf32>
    %cst_108 = arith.constant dense<0.000000e+00> : vector<10x10xf32>
    %134 = tpu.matmul %133, %133, %cst_108 {dimension_numbers = #tpu.dot_dimension_numbers<[1], [1], [0], [0], [0, 0, 1, 0], [], []>} : vector<10x32xf32>, vector<10x32xf32>, vector<10x10xf32> -> vector<10x10xf32>
    %135 = arith.mulf %105, %134 : vector<10x10xf32>
    %cst_109 = arith.constant dense<0.000000e+00> : vector<10x32xf32>
    %136 = tpu.matmul %135, %127, %cst_109 {dimension_numbers = #tpu.dot_dimension_numbers<[1], [0], [0], [1], [0, 0, 1, 1], [], []>} : vector<10x10xf32>, vector<10x32xf32>, vector<10x32xf32> -> vector<10x32xf32>
    %137 = vector.broadcast %109 : vector<1x32xf32> to vector<10x32xf32>
    %138 = arith.addf %136, %137 : vector<10x32xf32>
    %cst_110 = arith.constant 0.999994993 : f32
    %139 = vector.broadcast %cst_110 : f32 to vector<10x32xf32>
    %140 = arith.mulf %138, %139 : vector<10x32xf32>
    %cst_111 = arith.constant 0.000000e+00 : f32
    %141 = vector.broadcast %cst_111 : f32 to vector<10x32xf32>
    %142 = arith.maximumf %140, %141 : vector<10x32xf32>
    %143 = arith.addf %142, %138 : vector<10x32xf32>
    %144 = arith.addf %143, %94 : vector<10x32xf32>
    %c0_112 = arith.constant 0 : index
    %c3 = arith.constant 3 : index
    %c0_113 = arith.constant 0 : index
    %c0_114 = arith.constant 0 : index
    %145 = vector.load %arg11[%c0_112, %c3, %c0_113, %c0_114] : memref<1x4x10x32xf32, #tpu.memory_space<vmem>>, vector<1x1x10x32xf32>
    %146 = vector.shape_cast %145 : vector<1x1x10x32xf32> to vector<10x32xf32>
    %147 = vector.shape_cast %144 : vector<10x32xf32> to vector<1x1x10x32xf32>
    tpu.vector_store %arg11[%c0_112, %c3, %c0_113, %c0_114], %147 {strides = array<i32>} : memref<1x4x10x32xf32, #tpu.memory_space<vmem>>, vector<1x1x10x32xf32>,
    %cst_115 = arith.constant dense<0.000000e+00> : vector<10x16xf32>
    %148 = tpu.matmul %144, %6, %cst_115 {dimension_numbers = #tpu.dot_dimension_numbers<[1], [0], [0], [1], [0, 0, 1, 1], [], []>} : vector<10x32xf32>, vector<32x16xf32>, vector<10x16xf32> -> vector<10x16xf32>
    %149 = vector.broadcast %7 : vector<1x16xf32> to vector<10x16xf32>
    %150 = arith.addf %148, %149 : vector<10x16xf32>
    %c0_116 = arith.constant 0 : index
    %c1_117 = arith.constant 1 : index
    %c0_118 = arith.constant 0 : index
    %c0_119 = arith.constant 0 : index
    %151 = vector.load %arg10[%c0_116, %c1_117, %c0_118, %c0_119] : memref<1x2x10x16xf32, #tpu.memory_space<vmem>>, vector<1x1x10x16xf32>
    %152 = vector.shape_cast %151 : vector<1x1x10x16xf32> to vector<10x16xf32>
    %153 = vector.shape_cast %150 : vector<10x16xf32> to vector<1x1x10x16xf32>
    tpu.vector_store %arg10[%c0_116, %c1_117, %c0_118, %c0_119], %153 {strides = array<i32>} : memref<1x2x10x16xf32, #tpu.memory_space<vmem>>, vector<1x1x10x16xf32>,
    return
  }
  func.func @transform_0(%arg0: i32) -> (i32, i32, i32) {
    %c0_i32 = arith.constant 0 : i32
    %c0_i32_0 = arith.constant 0 : i32
    %c0_i32_1 = arith.constant 0 : i32
    %c0_i32_2 = arith.constant 0 : i32
    return %c0_i32, %c0_i32_0, %c0_i32_1 : i32, i32, i32
  }
  func.func @transform_1(%arg0: i32) -> (i32, i32, i32) {
    %c0_i32 = arith.constant 0 : i32
    %c0_i32_0 = arith.constant 0 : i32
    %c0_i32_1 = arith.constant 0 : i32
    return %arg0, %c0_i32, %c0_i32_0 : i32, i32, i32
  }
  func.func @transform_2(%arg0: i32) -> (i32, i32, i32) {
    %c0_i32 = arith.constant 0 : i32
    %c0_i32_0 = arith.constant 0 : i32
    %c0_i32_1 = arith.constant 0 : i32
    return %arg0, %c0_i32, %c0_i32_0 : i32, i32, i32
  }
  func.func @transform_3(%arg0: i32) -> (i32, i32, i32) {
    %c0_i32 = arith.constant 0 : i32
    %c0_i32_0 = arith.constant 0 : i32
    %c0_i32_1 = arith.constant 0 : i32
    return %arg0, %c0_i32, %c0_i32_0 : i32, i32, i32
  }
  func.func @transform_4(%arg0: i32) -> (i32, i32, i32, i32) {
    %c0_i32 = arith.constant 0 : i32
    %c0_i32_0 = arith.constant 0 : i32
    %c0_i32_1 = arith.constant 0 : i32
    %c0_i32_2 = arith.constant 0 : i32
    return %arg0, %c0_i32, %c0_i32_0, %c0_i32_1 : i32, i32, i32, i32
  }
  func.func @transform_5(%arg0: i32) -> (i32, i32, i32, i32) {
    %c0_i32 = arith.constant 0 : i32
    %c0_i32_0 = arith.constant 0 : i32
    %c0_i32_1 = arith.constant 0 : i32
    %c0_i32_2 = arith.constant 0 : i32
    return %arg0, %c0_i32, %c0_i32_0, %c0_i32_1 : i32, i32, i32, i32
  }
  func.func @transform_6(%arg0: i32) -> (i32, i32, i32, i32) {
    %c0_i32 = arith.constant 0 : i32
    %c0_i32_0 = arith.constant 0 : i32
    %c0_i32_1 = arith.constant 0 : i32
    %c0_i32_2 = arith.constant 0 : i32
    return %arg0, %c0_i32, %c0_i32_0, %c0_i32_1 : i32, i32, i32, i32
  }
  func.func @transform_7(%arg0: i32) -> (i32, i32) {
    %c0_i32 = arith.constant 0 : i32
    %c0_i32_0 = arith.constant 0 : i32
    %c0_i32_1 = arith.constant 0 : i32
    return %c0_i32, %c0_i32_0 : i32, i32
  }
  func.func @transform_8(%arg0: i32) -> (i32, i32) {
    %c0_i32 = arith.constant 0 : i32
    %c0_i32_0 = arith.constant 0 : i32
    %c0_i32_1 = arith.constant 0 : i32
    return %c0_i32, %c0_i32_0 : i32, i32
  }
  func.func @transform_9(%arg0: i32) -> (i32, i32, i32, i32) {
    %c0_i32 = arith.constant 0 : i32
    %c0_i32_0 = arith.constant 0 : i32
    %c0_i32_1 = arith.constant 0 : i32
    %c0_i32_2 = arith.constant 0 : i32
    return %arg0, %c0_i32, %c0_i32_0, %c0_i32_1 : i32, i32, i32, i32
  }
  func.func @transform_10(%arg0: i32) -> (i32, i32, i32, i32) {
    %c0_i32 = arith.constant 0 : i32
    %c0_i32_0 = arith.constant 0 : i32
    %c0_i32_1 = arith.constant 0 : i32
    %c0_i32_2 = arith.constant 0 : i32
    return %arg0, %c0_i32, %c0_i32_0, %c0_i32_1 : i32, i32, i32, i32
  }
}

</mosaic_0001>

<bundles_post_ra>
// kernel: _lambda_.1
= control target key start
LH: loop header
LB: loop body
LE: loop exit
PB: predicated region body
PF: predicated region fallthrough
CT: control target
= control target key end

     0   :  { %s1722_s13 = smov 0   ;;  %s2059_s0 = inlined_call_operand.vmem [shape: f32[2,10,16], index: 0, kind: input, shape index: {}]   ;;  %s2060_s1 = inlined_call_operand.vmem [shape: f32[2,10,10], index: 1, kind: input, shape index: {}]   ;;  %s2061_s2 = inlined_call_operand.vmem [shape: f32[2,16,32], index: 2, kind: input, shape index: {}]   ;;  %s2062_s3 = inlined_call_operand.vmem [shape: f32[2,1,32], index: 3, kind: input, shape index: {}]   ;;  %s2063_s4 = inlined_call_operand.vmem [shape: f32[2,2,10,10], index: 4, kind: input, shape index: {}]   ;;  %s2064_s5 = inlined_call_operand.vmem [shape: f32[2,2,32,32], index: 5, kind: input, shape index: {}]   ;;  %s2065_s6 = inlined_call_operand.vmem [shape: f32[2,2,1,32], index: 6, kind: input, shape index: {}]   ;;  %s2066_s7 = inlined_call_operand.vmem [shape: f32[32,16], index: 7, kind: input, shape index: {}]   ;;  %s2067_s8 = inlined_call_operand.vmem [shape: f32[1,16], index: 8, kind: input, shape index: {}]   ;;  %s2068_s9 = inlined_call_operand.vmem [shape: f32[2,2,10,16], index: 9, kind: output, shape index: {0}]   ;;  %s2069_s10 = inlined_call_operand.vmem [shape: f32[2,4,10,32], index: 10, kind: output, shape index: {1}]  }
   0x1 LB: > { %s1513_s14 = sadd.s32 4294967295, %s1665_s13   ;;  %p1517_p0 = scmp.ge.s32.totalorder %s1665_s13, 1  ;;  %s1665_s13 = sphi %s1722_s13, %s21_s13  }
   0x2   : > { %p362_p1 = scmp.lt.s32.totalorder %s1665_s13, 3 }
   0x4   : > { %p363_p2 = pnand %p1517_p0, %p362_p1 }
   0x5   : > { %p427_p3 = scmp.lt.s32.totalorder (!%p363_p2), %s1513_s14, 1 }
   0x6   : > { %366 = sbr.rel (%p363_p2) target bundleno = 2275 (0x8e3), region = 56 }
   0xb   : > { %v475_v0 = vld [vmem:[%s2059_s0 + $0x8] sm:$0x3]  ;;  %vm511_vm0 = vcmask 123904   ;;  %v474_v2 = vld [vmem:[%s2059_s0] sm:$0xff]  ;;  %vm476_vm1 = vcmask 130048   ;;  %s2071_s14 = smov (!%p427_p3, %s1513_s14), 1 }
   0xc   : > { %v507_v1 = vmul.f32 %v475_v0, %v475_v0  ;;  %v506_v4 = vmul.f32 %v474_v2, %v474_v2  ;;  %s1615_s19 = sshll.u32 %s2071_s14, 4  ;;  %s439_s25 = scalar_lea.vmem %s2062_s3, %s2071_s14  ;;  %vm578_vm8 = vcmask 1041408   ;;  %vm571_vm9 = vcmask 80896  }
   0xd   : > { %s436_s22 = scalar_lea.vmem %s2061_s2, %s1615_s19  ;;  %s1618_s26 = sshll.u32 %s2071_s14, 6  ;;  %v1798_v38 = vld [vmem:[%s439_s25] ss:$0 sm:$0xff]  ;;  %vm605_vm10 = vcmask 261120   ;;  %vm607_vm11 = vcmask 254976  }
   0xe   : > { %v512_v3 = vsel %vm511_vm0, %v507_v1, 0.0  ;;  %v508_v5 = vsel %vm476_vm1, %v506_v4, 0.0  ;;  %v1746_v6 = vld [vmem:[%s436_s22 + $0x8] sm:$0xff]  ;;  %v1749_v7 = vld [vmem:[%s436_s22] sm:$0xff]  ;;  %s1767_s29 = scalar_lea.vmem %s2064_s5, %s1618_s26  ;;  %s431_s12 = scalar_lea.vmem %s2060_s1, %s1615_s19 }
   0xf   : > { %513 = vadd.xlane.f32.xlu0 %v512_v3  ;;  %497 = vmatpush.msra.mxu0 %v1746_v6  ;;  %v1770_v28 = vld [vmem:[%s1767_s29 + $0x18] sm:$0xff]  ;;  %v1773_v29 = vld [vmem:[%s1767_s29 + $0x10] sm:$0xff]  ;;  %v1782_v30 = vld [vmem:[%s431_s12] sm:$0xff]  ;;  %s1803_s17 = scalar_lea.vmem %s2069_s10, %s1618_s26  ;;  %s1526_s18 = sshll.u32 %s2071_s14, 1 }
  0x10   : > { %644 = vmatpush.msra.mxu3 %v1770_v28  ;;  %v1786_v33 = vld [vmem:[%s431_s12 + $0x8] sm:$0x3]  ;;  %v1795_v37 = vld [vmem:[%s1767_s29] sm:$0xff]  ;;  %s1838_s21 = scalar_lea.vmem %s2065_s6, %s1526_s18  ;;  %s1617_s22 = sshll.u32 %s2071_s14, 5 }
  0x11   : > { %498 = vmatpush.msra.mxu0 %v1749_v7  ;;  %v1791_v36 = vld [vmem:[%s1767_s29 + $0x8] sm:$0xff]  ;;  %s1846_s25 = scalar_lea.vmem %s2063_s4, %s1617_s22  ;;  %s2002_s28 = scalar_lea.vmem %s2068_s9, %s1617_s22 }
  0x12   : > { %1531 = vmatmul.msk.f32.vlgmr.msra.gmra.mxu0 %vm476_vm1, %v474_v2  ;;  %645 = vmatpush.msra.mxu3 %v1773_v29  ;;  %v1849_v3 = vld [vmem:[%s1846_s25] sm:$0xff] }
  0x14   : > { %646 = vmatpush.msra.mxu3 %v1791_v36 }
  0x16   : > { %647 = vmatpush.msra.mxu3 %v1795_v37 }
  0x17   : > { %509 = vadd.xlane.f32.xlu0 %v508_v5 }
  0x1a   : > { %1532 = vmatmul.msk.f32.gmra.mxu0 %vm476_vm1, %v475_v0 }
  0x82   : > { %v514_v8 = vpop.xlane.xlu0 %513 }
  0x83   : > { %1635 = vrsqrt.f32 %v514_v8  ;;  %vm531_vm3 = vweird.f32 %v514_v8 }
  0x89   : > { %v1636_v9 = vpop.eup %1635 }
  0x8a   : > { %v526_v10 = vmul.f32 %v1636_v9, %v514_v8  ;;  %v510_v11 = vpop.xlane.xlu0 %509  ;;  %vm532_vm2 = vweird.f32 %v1636_v9  ;;  %v610_v8 = vld [vmem:[%s1846_s25 + $0x8] sm:$0x3] }
  0x8b   : > { %1637 = vrsqrt.f32 %v510_v11  ;;  %vm533_vm4 = vmor %vm531_vm3, %vm532_vm2  ;;  %vm521_vm6 = vweird.f32 %v510_v11 }
  0x8c   : > { %v527_v12 = vmul.f32 %v1636_v9, %v526_v10 }
  0x8e   : > { %v528_v13 = vmul.f32 0.5, %v527_v12  ;;  %v1860_v12 = vld [vmem:[%s1767_s29 + $0x30] sm:$0xff] }
  0x8f   : > { %v500_v26 = vpop.f32.mrf.mxu0 }
  0x90   : > { %v529_v14 = vsub.f32 1.5, %v528_v13  ;;  %v1864_v13 = vld [vmem:[%s1767_s29 + $0x28] sm:$0xff] }
  0x91   : > { %v1638_v15 = vpop.eup %1637 }
  0x92   : > { %v516_v16 = vmul.f32 %v1638_v15, %v510_v11  ;;  %v530_v17 = vmul.f32 %v1636_v9, %v529_v14  ;;  %vm522_vm5 = vweird.f32 %v1638_v15  ;;  %v1856_v11 = vld [vmem:[%s1767_s29 + $0x38] sm:$0xff]  ;;  %v1868_v14 = vld [vmem:[%s1767_s29 + $0x20] sm:$0xff] }
  0x93   : > { %vm523_vm7 = vmor %vm521_vm6, %vm522_vm5 }
  0x94   : > { %v517_v18 = vmul.f32 %v1638_v15, %v516_v16  ;;  %v534_v19 = vsel %vm533_vm4, %v1636_v9, %v530_v17 }
  0x95   : > { %v536_v20 = vmul.f32 %v534_v19, %v475_v0  ;;  %v1630_v19 = vld [vmem:[%s1838_s21] ss:$0 sm:$0xff] }
  0x96   : > { %v518_v21 = vmul.f32 0.5, %v517_v18  ;;  %v1884_v18 = vld [vmem:[%s2059_s0 + $0x10] sm:$0xff] }
  0x97   : > { %1533 = vmatpush.xpose.msk.msra.mxu1 %vm476_vm1, %v536_v20  ;;  %v503_v27 = vpop.f32.mrf.mxu0 }
  0x98   : > { %v519_v22 = vsub.f32 1.5, %v518_v21  ;;  %1537 = vmatpush.msk.msra.mxu2 %vm578_vm8, %v503_v27 }
  0x9a   : > { %v520_v23 = vmul.f32 %v1638_v15, %v519_v22  ;;  %597 = vmatpush.msra.mxu2 %v500_v26 }
  0x9c   : > { %v524_v24 = vsel %vm523_vm7, %v1638_v15, %v520_v23  ;;  %v1876_v15 = vld [vmem:[%s2059_s0 + $0x18] sm:$0x3] }
  0x9d   : > { %v535_v25 = vmul.f32 %v524_v24, %v474_v2  ;;  %v960_v16 = vmul.f32 %v1876_v15, %v1876_v15 }
  0x9f   : > { %1534 = vmatpush.xpose.msk.msra.mxu1 %vm476_vm1, %v535_v25  ;;  %v964_v17 = vsel %vm511_vm0, %v960_v16, 0.0 }
  0xa0   : > { %965 = vadd.xlane.f32.xlu0 %v964_v17 }
  0xa2   : > { %1535 = vmatmul.msk.f32.vlgmr.msra.gmra.mxu1 %vm476_vm1, %v535_v25 }
  0xa3   : > { %775 = vmatpush.msrb.mxu1 %v1856_v11 }
  0xa5   : > { %776 = vmatpush.msrb.mxu1 %v1860_v12 }
  0xa7   : > { %777 = vmatpush.msrb.mxu1 %v1864_v13 }
  0xa9   : > { %778 = vmatpush.msrb.mxu1 %v1868_v14 }
  0xaa   : > { %1536 = vmatmul.msk.f32.gmra.mxu1 %vm476_vm1, %v536_v20 }
  0xab   : > { %950 = vmatpush.msra.mxu1 %v1746_v6  ;;  %v959_v6 = vmul.f32 %v1884_v18, %v1884_v18 }
  0xad   : > { %951 = vmatpush.msra.mxu1 %v1749_v7  ;;  %v961_v7 = vsel %vm476_vm1, %v959_v6, 0.0 }
 0x11f   : > { %v560_v31 = vpop.f32.mrf.mxu1 }
 0x120   : > { %v566_v32 = vmul.f32 %v560_v31, %v1782_v30 }
 0x122   : > { %1538 = vmatmul.msk.f32.vlgmr.msra.gmra.mxu2 %vm571_vm9, %v566_v32 }
 0x127   : > { %v563_v34 = vpop.f32.mrf.mxu1 }
 0x128   : > { %v567_v35 = vmul.f32 %v563_v34, %v1786_v33 }
 0x12a   : > { %1539 = vmatmul.msk.f32.gmra.mxu2 %vm571_vm9, %v567_v35 }
 0x1a5   : > { %v599_v39 = vpop.f32.mrf.mxu2 }
 0x1a6   : > { %v1806_v40 = vadd.f32 %v1798_v38, %v599_v39 }
 0x1a8   : > { %606 = vst.msk [vmem:[%s1803_s17] sm:$0xff] %vm605_vm10, %v1806_v40  ;;  %1547 = vmatmul.msk.f32.vlgmr.msra.gmra.mxu3 %vm605_vm10, %v1806_v40  ;;  %v655_v45 = vmul.f32 %v1806_v40, %v1806_v40 }
 0x1aa   : > { %v657_v46 = vsel %vm605_vm10, %v655_v45, 0.0 }
 0x1ad   : > { %v602_v41 = vpop.f32.mrf.mxu2 }
 0x1ae   : > { %v1814_v42 = vadd.f32 %v1798_v38, %v602_v41 }
 0x1b0   : > { %1548 = vmatmul.msk.f32.gmra.mxu3 %vm605_vm10, %v1814_v42  ;;  %v656_v43 = vmul.f32 %v1814_v42, %v1814_v42  ;;  %608 = vst.msk [vmem:[%s1803_s17 + $0x8] sm:$0x3] %vm607_vm11, %v1814_v42 }
 0x1b2   : > { %v660_v44 = vsel %vm607_vm11, %v656_v43, 0.0  ;;  %v966_v43 = vpop.xlane.xlu0 %965 }
 0x1b3   : > { %661 = vadd.xlane.f32.xlu1 %v660_v44  ;;  %vm983_vm7 = vweird.f32 %v966_v43 }
 0x1bb   : > { %658 = vadd.xlane.f32.xlu1 %v657_v46 }
 0x1c3   : > { %962 = vadd.xlane.f32.xlu1 %v961_v7 }
 0x226   : > { %v662_v47 = vpop.xlane.xlu1 %661 }
 0x227   : > { %1639 = vrsqrt.f32 %v662_v47  ;;  %vm679_vm13 = vweird.f32 %v662_v47 }
 0x22b   : > { %v649_v48 = vpop.f32.mrf.mxu3 }
 0x22d   : > { %v1640_v49 = vpop.eup %1639 }
 0x22e   : > { %v674_v50 = vmul.f32 %v1640_v49, %v662_v47  ;;  %v659_v51 = vpop.xlane.xlu1 %658  ;;  %vm680_vm12 = vweird.f32 %v1640_v49 }
 0x22f   : > { %1641 = vrsqrt.f32 %v659_v51  ;;  %vm681_vm14 = vmor %vm679_vm13, %vm680_vm12  ;;  %vm669_vm2 = vweird.f32 %v659_v51 }
 0x230   : > { %v675_v52 = vmul.f32 %v1640_v49, %v674_v50  ;;  %1643 = vrsqrt.f32 %v966_v43 }
 0x232   : > { %v676_v53 = vmul.f32 0.5, %v675_v52 }
 0x233   : > { %v652_v54 = vpop.f32.mrf.mxu3 }
 0x234   : > { %v677_v55 = vsub.f32 1.5, %v676_v53  ;;  %1553 = vmatpush.msk.msrb.mxu2 %vm578_vm8, %v652_v54 }
 0x235   : > { %v1642_v56 = vpop.eup %1641 }
 0x236   : > { %v678_v57 = vmul.f32 %v1640_v49, %v677_v55  ;;  %v664_v58 = vmul.f32 %v1642_v56, %v659_v51  ;;  %743 = vmatpush.msrb.mxu2 %v649_v48  ;;  %vm670_vm15 = vweird.f32 %v1642_v56  ;;  %v963_v44 = vpop.xlane.xlu1 %962  ;;  %v1644_v47 = vpop.eup %1643 }
 0x237   : > { %vm671_vm3 = vmor %vm669_vm2, %vm670_vm15  ;;  %1645 = vrsqrt.f32 %v963_v44  ;;  %v978_v48 = vmul.f32 %v1644_v47, %v966_v43  ;;  %vm984_vm12 = vweird.f32 %v1644_v47  ;;  %vm973_vm15 = vweird.f32 %v963_v44 }
 0x238   : > { %v665_v59 = vmul.f32 %v1642_v56, %v664_v58  ;;  %v682_v60 = vsel %vm681_vm14, %v1640_v49, %v678_v57  ;;  %vm985_vm13 = vmor %vm983_vm7, %vm984_vm12 }
 0x239   : > { %v684_v61 = vmul.f32 %v682_v60, %v1814_v42  ;;  %v979_v54 = vmul.f32 %v1644_v47, %v978_v48 }
 0x23a   : > { %v666_v62 = vmul.f32 0.5, %v665_v59 }
 0x23b   : > { %1549 = vmatpush.xpose.msk.msrb.mxu0 %vm605_vm10, %v684_v61  ;;  %v980_v58 = vmul.f32 0.5, %v979_v54 }
 0x23c   : > { %v667_v63 = vsub.f32 1.5, %v666_v62 }
 0x23d   : > { %v1646_v49 = vpop.eup %1645 }
 0x23e   : > { %v668_v0 = vmul.f32 %v1642_v56, %v667_v63  ;;  %v968_v55 = vmul.f32 %v1646_v49, %v963_v44  ;;  %vm974_vm2 = vweird.f32 %v1646_v49 }
 0x240   : > { %v672_v1 = vsel %vm671_vm3, %v1642_v56, %v668_v0  ;;  %v969_v59 = vmul.f32 %v1646_v49, %v968_v55  ;;  %v981_v0 = vsub.f32 1.5, %v980_v58 }
 0x241   : > { %v683_v2 = vmul.f32 %v672_v1, %v1806_v40 }
 0x242   : > { %v970_v1 = vmul.f32 0.5, %v969_v59 }
 0x243   : > { %1550 = vmatpush.xpose.msk.msrb.mxu0 %vm605_vm10, %v683_v2 }
 0x246   : > { %1551 = vmatmul.msk.f32.vlgmr.msrb.gmra.mxu0 %vm605_vm10, %v683_v2 }
 0x24e   : > { %1552 = vmatmul.msk.f32.gmra.mxu0 %vm605_vm10, %v684_v61 }
 0x2c3   : > { %v708_v4 = vpop.f32.mrf.mxu0 }
 0x2c4   : > { %v714_v5 = vmul.f32 %v708_v4, %v1849_v3 }
 0x2c6   : > { %1554 = vmatmul.msk.f32.vlgmr.msrb.gmra.mxu2 %vm571_vm9, %v714_v5 }
 0x2cb   : > { %v711_v9 = vpop.f32.mrf.mxu0 }
 0x2cc   : > { %v715_v10 = vmul.f32 %v711_v9, %v610_v8  ;;  %v982_v9 = vmul.f32 %v1644_v47, %v981_v0 }
 0x2ce   : > { %1555 = vmatmul.msk.f32.gmra.mxu2 %vm571_vm9, %v715_v10  ;;  %v971_v10 = vsub.f32 1.5, %v970_v1  ;;  %v986_v6 = vsel %vm985_vm13, %v1644_v47, %v982_v9 }
 0x2d0   : > { %v972_v7 = vmul.f32 %v1646_v49, %v971_v10 }
 0x349   : > { %v745_v20 = vpop.f32.mrf.mxu2 }
 0x34a   : > { %v746_v21 = vadd.f32 %v1630_v19, %v745_v20 }
 0x34c   : > { %v751_v22 = vmul.f32 0.999995, %v746_v21  ;;  %v988_v21 = vmul.f32 %v1876_v15, %v986_v6 }
 0x34e   : > { %v753_v23 = vmax.f32 %v751_v22, 0.0 }
 0x350   : > { %v1891_v24 = vadd.f32 %v753_v23, %v1806_v40 }
 0x351   : > { %v748_v25 = vpop.f32.mrf.mxu2 }
 0x352   : > { %v749_v26 = vadd.f32 %v1630_v19, %v748_v25  ;;  %1556 = vmatmul.msk.f32.vlgmr.msrb.gmra.mxu1 %vm605_vm10, %v1891_v24  ;;  %v786_v39 = vmul.f32 %v1891_v24, %v1891_v24  ;;  %v1919_v25 = vld [vmem:[%s1846_s25 + $0x10] sm:$0xff] }
 0x354   : > { %v752_v27 = vmul.f32 0.999995, %v749_v26  ;;  %v788_v41 = vsel %vm605_vm10, %v786_v39, 0.0 }
 0x356   : > { %v754_v31 = vmax.f32 %v752_v27, 0.0 }
 0x358   : > { %v756_v32 = vadd.f32 %v754_v31, %v1814_v42 }
 0x35a   : > { %1557 = vmatmul.msk.f32.gmra.mxu1 %vm605_vm10, %v756_v32  ;;  %v787_v34 = vmul.f32 %v756_v32, %v756_v32 }
 0x35c   : > { %v791_v35 = vsel %vm607_vm11, %v787_v34, 0.0 }
 0x35d   : > { %792 = vadd.xlane.f32.xlu2 %v791_v35 }
 0x362   : > { %1571 = vmatmul.msk.f32.vlgmr.msra.gmra.mxu1 %vm476_vm1, %v1884_v18 }
 0x365   : > { %789 = vadd.xlane.f32.xlu2 %v788_v41 }
 0x36a   : > { %1572 = vmatmul.msk.f32.gmra.mxu1 %vm476_vm1, %v1876_v15 }
 0x3cf   : > { %v780_v45 = vpop.f32.mrf.mxu1 }
 0x3d0   : > { %v793_v46 = vpop.xlane.xlu2 %792 }
 0x3d1   : > { %1647 = vrsqrt.f32 %v793_v46  ;;  %vm810_vm5 = vweird.f32 %v793_v46 }
 0x3d7   : > { %v1648_v50 = vpop.eup %1647  ;;  %v783_v51 = vpop.f32.mrf.mxu1 }
 0x3d8   : > { %v805_v52 = vmul.f32 %v1648_v50, %v793_v46  ;;  %v790_v53 = vpop.xlane.xlu2 %789  ;;  %1562 = vmatpush.msk.msra.mxu0 %vm578_vm8, %v783_v51  ;;  %vm811_vm4 = vweird.f32 %v1648_v50 }
 0x3d9   : > { %1649 = vrsqrt.f32 %v790_v53  ;;  %vm812_vm6 = vmor %vm810_vm5, %vm811_vm4  ;;  %vm800_vm3 = vweird.f32 %v790_v53 }
 0x3da   : > { %v806_v56 = vmul.f32 %v1648_v50, %v805_v52  ;;  %874 = vmatpush.msra.mxu0 %v780_v45  ;;  %vm975_vm5 = vmor %vm973_vm15, %vm974_vm2 }
 0x3db   : > { %v976_v22 = vsel %vm975_vm5, %v1646_v49, %v972_v7 }
 0x3dc   : > { %v807_v57 = vmul.f32 0.5, %v806_v56  ;;  %v987_v23 = vmul.f32 %v1884_v18, %v976_v22  ;;  %v1541_v18 = vld [vmem:[%s1846_s25 + $0x18] sm:$0x3] }
 0x3de   : > { %v808_v60 = vsub.f32 1.5, %v807_v57 }
 0x3df   : > { %v1650_v61 = vpop.eup %1649 }
 0x3e0   : > { %v809_v62 = vmul.f32 %v1648_v50, %v808_v60  ;;  %v795_v63 = vmul.f32 %v1650_v61, %v790_v53  ;;  %vm801_vm14 = vweird.f32 %v1650_v61 }
 0x3e1   : > { %vm802_vm4 = vmor %vm800_vm3, %vm801_vm14 }
 0x3e2   : > { %v796_v2 = vmul.f32 %v1650_v61, %v795_v63  ;;  %v813_v4 = vsel %vm812_vm6, %v1648_v50, %v809_v62 }
 0x3e3   : > { %v815_v5 = vmul.f32 %v813_v4, %v756_v32 }
 0x3e4   : > { %v797_v8 = vmul.f32 0.5, %v796_v2 }
 0x3e5   : > { %1558 = vmatpush.xpose.msk.msrb.mxu3 %vm605_vm10, %v815_v5 }
 0x3e6   : > { %v798_v16 = vsub.f32 1.5, %v797_v8 }
 0x3e8   : > { %v799_v17 = vmul.f32 %v1650_v61, %v798_v16 }
 0x3ea   : > { %v803_v19 = vsel %vm802_vm4, %v1650_v61, %v799_v17 }
 0x3eb   : > { %v814_v20 = vmul.f32 %v803_v19, %v1891_v24  ;;  %v953_v24 = vpop.f32.mrf.mxu1 }
 0x3ed   : > { %1559 = vmatpush.xpose.msk.msrb.mxu3 %vm605_vm10, %v814_v20 }
 0x3f0   : > { %1560 = vmatmul.msk.f32.vlgmr.msrb.gmra.mxu3 %vm605_vm10, %v814_v20 }
 0x3f1   : > { %1573 = vmatpush.xpose.msk.msra.mxu3 %vm476_vm1, %v988_v21 }
 0x3f3   : > { %v956_v15 = vpop.f32.mrf.mxu1 }
 0x3f4   : > { %1577 = vmatpush.msk.msrb.mxu0 %vm578_vm8, %v956_v15  ;;  %v1056_v15 = vld [vmem:[%s1846_s25 + $0x8] sm:$0x3] }
 0x3f5   : > { %1574 = vmatpush.xpose.msk.msra.mxu3 %vm476_vm1, %v987_v23 }
 0x3f6   : > { %1044 = vmatpush.msrb.mxu0 %v953_v24 }
 0x3f8   : > { %1561 = vmatmul.msk.f32.gmra.mxu3 %vm605_vm10, %v815_v5 }
 0x400   : > { %1575 = vmatmul.msk.f32.vlgmr.msra.gmra.mxu3 %vm476_vm1, %v987_v23 }
 0x408   : > { %1576 = vmatmul.msk.f32.gmra.mxu3 %vm476_vm1, %v988_v21 }
 0x473   : > { %v839_v26 = vpop.f32.mrf.mxu3 }
 0x474   : > { %v845_v27 = vmul.f32 %v1919_v25, %v839_v26 }
 0x476   : > { %1563 = vmatmul.msk.f32.vlgmr.msra.gmra.mxu0 %vm571_vm9, %v845_v27 }
 0x477   : > { %1218 = vmatpush.msra.mxu0 %v1856_v11 }
 0x479   : > { %1219 = vmatpush.msra.mxu0 %v1860_v12  ;;  %v1936_v12 = vld [vmem:[%s2066_s7 + $0x18] sm:$0xff] }
 0x47a   : > { %914 = vmatpush.msra.mxu2 %v1936_v12 }
 0x47b   : > { %v842_v31 = vpop.f32.mrf.mxu3  ;;  %1220 = vmatpush.msra.mxu0 %v1864_v13  ;;  %v1942_v13 = vld [vmem:[%s2066_s7 + $0x10] sm:$0xff] }
 0x47c   : > { %v846_v32 = vmul.f32 %v1541_v18, %v842_v31  ;;  %915 = vmatpush.msra.mxu2 %v1942_v13  ;;  %v1633_v18 = vld [vmem:[%s1838_s21] ss:$0 sm:$0xff] }
 0x47d   : > { %1221 = vmatpush.msra.mxu0 %v1868_v14  ;;  %v1631_v14 = vld [vmem:[%s1838_s21 + $0x1] ss:$0 sm:$0xff] }
 0x47e   : > { %1564 = vmatmul.msk.f32.gmra.mxu0 %vm571_vm9, %v846_v32 }
 0x483   : > { %v1012_v34 = vpop.f32.mrf.mxu3 }
 0x484   : > { %v1018_v35 = vmul.f32 %v1012_v34, %v1782_v30  ;;  %v1948_v30 = vld [vmem:[%s2066_s7 + $0x8] sm:$0xff] }
 0x485   : > { %916 = vmatpush.msra.mxu2 %v1948_v30 }
 0x486   : > { %1578 = vmatmul.msk.f32.vlgmr.msrb.gmra.mxu0 %vm571_vm9, %v1018_v35 }
 0x48b   : > { %v1015_v39 = vpop.f32.mrf.mxu3 }
 0x48c   : > { %v1019_v11 = vmul.f32 %v1015_v39, %v1786_v33  ;;  %v1954_v33 = vld [vmem:[%s2066_s7] sm:$0xff] }
 0x48d   : > { %917 = vmatpush.msra.mxu2 %v1954_v33 }
 0x48e   : > { %1579 = vmatmul.msk.f32.gmra.mxu0 %vm571_vm9, %v1019_v11 }
 0x48f   : > { %1087 = vmatpush.msrb.mxu2 %v1770_v28 }
 0x491   : > { %1088 = vmatpush.msrb.mxu2 %v1773_v29 }
 0x493   : > { %1089 = vmatpush.msrb.mxu2 %v1791_v36 }
 0x495   : > { %1090 = vmatpush.msrb.mxu2 %v1795_v37 }
 0x4f3   : > { %v876_v41 = vpop.f32.mrf.mxu0 }
 0x4f4   : > { %v877_v43 = vadd.f32 %v1631_v14, %v876_v41 }
 0x4f6   : > { %v882_v44 = vmul.f32 0.999995, %v877_v43 }
 0x4f8   : > { %v884_v45 = vmax.f32 %v882_v44, 0.0 }
 0x4fa   : > { %v886_v46 = vadd.f32 %v884_v45, %v877_v43 }
 0x4fb   : > { %v879_v47 = vpop.f32.mrf.mxu0 }
 0x4fc   : > { %v888_v48 = vadd.f32 %v886_v46, %v1806_v40  ;;  %v880_v49 = vadd.f32 %v1631_v14, %v879_v47 }
 0x4fe   : > { %1565 = vst.msk [vmem:[%s1803_s17 + $0x20] sm:$0xff] %vm605_vm10, %v888_v48  ;;  %v883_v28 = vmul.f32 0.999995, %v880_v49  ;;  %1567 = vmatmul.msk.f32.vlgmr.msra.gmra.mxu2 %vm605_vm10, %v888_v48 }
 0x500   : > { %v885_v29 = vmax.f32 %v883_v28, 0.0 }
 0x502   : > { %v887_v36 = vadd.f32 %v885_v29, %v880_v49 }
 0x503   : > { %v1046_v37 = vpop.f32.mrf.mxu0 }
 0x504   : > { %v1967_v50 = vadd.f32 %v1798_v38, %v1046_v37  ;;  %v889_v51 = vadd.f32 %v887_v36, %v1814_v42 }
 0x506   : > { %1580 = vst.msk [vmem:[%s1803_s17 + $0x10] sm:$0xff] %vm605_vm10, %v1967_v50  ;;  %1568 = vmatmul.msk.f32.gmra.mxu2 %vm605_vm10, %v889_v51  ;;  %v1098_v40 = vmul.f32 %v1967_v50, %v1967_v50 }
 0x507   : > { %1566 = vst.msk [vmem:[%s1803_s17 + $0x28] sm:$0x3] %vm607_vm11, %v889_v51 }
 0x508   : > { %v1100_v52 = vsel %vm605_vm10, %v1098_v40, 0.0 }
 0x509   : > { %1101 = vadd.xlane.f32.xlu0 %v1100_v52 }
 0x50b   : > { %v1049_v53 = vpop.f32.mrf.mxu0 }
 0x50c   : > { %v1980_v54 = vadd.f32 %v1798_v38, %v1049_v53  ;;  %v1995_v38 = vld [vmem:[%s2067_s8] ss:$0 sm:$0xff] }
 0x50e   : > { %1581 = vst.msk [vmem:[%s1803_s17 + $0x18] sm:$0x3] %vm607_vm11, %v1980_v54  ;;  %1589 = vmatmul.msk.f32.vlgmr.msrb.gmra.mxu2 %vm605_vm10, %v1967_v50  ;;  %v1099_v42 = vmul.f32 %v1980_v54, %v1980_v54 }
 0x510   : > { %v1103_v55 = vsel %vm607_vm11, %v1099_v42, 0.0 }
 0x511   : > { %1104 = vadd.xlane.f32.xlu2 %v1103_v55 }
 0x516   : > { %1590 = vmatmul.msk.f32.gmra.mxu2 %vm605_vm10, %v1980_v54 }
 0x57c   : > { %v1102_v56 = vpop.xlane.xlu0 %1101 }
 0x57d   : > { %1651 = vrsqrt.f32 %v1102_v56  ;;  %vm1112_vm14 = vweird.f32 %v1102_v56 }
 0x581   : > { %v919_v57 = vpop.f32.mrf.mxu2 }
 0x582   : > { %v920_v58 = vadd.f32 %v1995_v38, %v919_v57 }
 0x583   : > { %v1652_v59 = vpop.eup %1651 }
 0x584   : > { %v1107_v60 = vmul.f32 %v1652_v59, %v1102_v56  ;;  %925 = vst.msk [vmem:[%s2002_s28] sm:$0xff] %vm476_vm1, %v920_v58  ;;  %v1105_v61 = vpop.xlane.xlu2 %1104  ;;  %vm1113_vm7 = vweird.f32 %v1652_v59 }
 0x585   : > { %1653 = vrsqrt.f32 %v1105_v61  ;;  %vm1122_vm12 = vweird.f32 %v1105_v61  ;;  %vm1114_vm15 = vmor %vm1112_vm14, %vm1113_vm7 }
 0x586   : > { %v1108_v62 = vmul.f32 %v1652_v59, %v1107_v60 }
 0x588   : > { %v1109_v2 = vmul.f32 0.5, %v1108_v62  ;;  %v1583_v62 = vld [vmem:[%s1846_s25 + $0x18] sm:$0x3] }
 0x589   : > { %v922_v63 = vpop.f32.mrf.mxu2 }
 0x58a   : > { %v923_v0 = vadd.f32 %v1995_v38, %v922_v63  ;;  %v1110_v8 = vsub.f32 1.5, %v1109_v2 }
 0x58b   : > { %v1654_v1 = vpop.eup %1653 }
 0x58c   : > { %v1117_v4 = vmul.f32 %v1654_v1, %v1105_v61  ;;  %926 = vst.msk [vmem:[%s2002_s28 + $0x8] sm:$0x3] %vm511_vm0, %v923_v0  ;;  %vm1123_vm6 = vweird.f32 %v1654_v1  ;;  %v1111_v17 = vmul.f32 %v1652_v59, %v1110_v8 }
 0x58d   : > { %vm1124_vm13 = vmor %vm1122_vm12, %vm1123_vm6 }
 0x58e   : > { %v1118_v5 = vmul.f32 %v1654_v1, %v1117_v4  ;;  %v1115_v20 = vsel %vm1114_vm15, %v1652_v59, %v1111_v17 }
 0x58f   : > { %v1126_v22 = vmul.f32 %v1115_v20, %v1967_v50 }
 0x590   : > { %v1119_v9 = vmul.f32 0.5, %v1118_v5 }
 0x591   : > { %v1092_v10 = vpop.f32.mrf.mxu2 }
 0x592   : > { %v1120_v16 = vsub.f32 1.5, %v1119_v9 }
 0x594   : > { %v1121_v6 = vmul.f32 %v1654_v1, %v1120_v16 }
 0x596   : > { %v1125_v7 = vsel %vm1124_vm13, %v1654_v1, %v1121_v6  ;;  %v1634_v1 = vld [vmem:[%s1838_s21 + $0x1] ss:$0 sm:$0xff] }
 0x597   : > { %v1127_v19 = vmul.f32 %v1125_v7, %v1980_v54 }
 0x599   : > { %v1095_v21 = vpop.f32.mrf.mxu2  ;;  %1591 = vmatpush.xpose.msk.msrb.mxu1 %vm605_vm10, %v1127_v19 }
 0x59a   : > { %1595 = vmatpush.msk.msrb.mxu3 %vm578_vm8, %v1095_v21 }
 0x59c   : > { %1186 = vmatpush.msrb.mxu3 %v1092_v10 }
 0x59d   : > { %1592 = vmatpush.xpose.msk.msrb.mxu1 %vm605_vm10, %v1126_v22 }
 0x59e   : > { %1354 = vmatpush.msra.mxu3 %v1936_v12 }
 0x5a0   : > { %1355 = vmatpush.msra.mxu3 %v1942_v13  ;;  %1593 = vmatmul.msk.f32.vlgmr.msrb.gmra.mxu1 %vm605_vm10, %v1126_v22 }
 0x5a2   : > { %1356 = vmatpush.msra.mxu3 %v1948_v30 }
 0x5a4   : > { %1357 = vmatpush.msra.mxu3 %v1954_v33 }
 0x5a8   : > { %1594 = vmatmul.msk.f32.gmra.mxu1 %vm605_vm10, %v1127_v19 }
 0x61d   : > { %v1151_v23 = vpop.f32.mrf.mxu1 }
 0x61e   : > { %v1157_v24 = vmul.f32 %v1151_v23, %v1849_v3 }
 0x620   : > { %1596 = vmatmul.msk.f32.vlgmr.msrb.gmra.mxu3 %vm571_vm9, %v1157_v24 }
 0x625   : > { %v1154_v26 = vpop.f32.mrf.mxu1 }
 0x626   : > { %v1158_v27 = vmul.f32 %v1154_v26, %v1056_v15 }
 0x628   : > { %1597 = vmatmul.msk.f32.gmra.mxu3 %vm571_vm9, %v1158_v27 }
 0x6a3   : > { %v1188_v31 = vpop.f32.mrf.mxu3 }
 0x6a4   : > { %v1189_v32 = vadd.f32 %v1633_v18, %v1188_v31 }
 0x6a6   : > { %v1194_v34 = vmul.f32 0.999995, %v1189_v32 }
 0x6a8   : > { %v1196_v35 = vmax.f32 %v1194_v34, 0.0 }
 0x6aa   : > { %v1198_v39 = vadd.f32 %v1196_v35, %v1967_v50 }
 0x6ab   : > { %v1191_v11 = vpop.f32.mrf.mxu3 }
 0x6ac   : > { %v1192_v12 = vadd.f32 %v1633_v18, %v1191_v11  ;;  %1598 = vmatmul.msk.f32.vlgmr.msra.gmra.mxu0 %vm605_vm10, %v1198_v39  ;;  %v1229_v13 = vmul.f32 %v1198_v39, %v1198_v39 }
 0x6ae   : > { %v1195_v3 = vmul.f32 0.999995, %v1192_v12  ;;  %v1231_v30 = vsel %vm605_vm10, %v1229_v13, 0.0 }
 0x6af   : > { %1232 = vadd.xlane.f32.xlu2 %v1231_v30 }
 0x6b0   : > { %v1197_v33 = vmax.f32 %v1195_v3, 0.0 }
 0x6b2   : > { %v1199_v14 = vadd.f32 %v1197_v33, %v1980_v54 }
 0x6b4   : > { %1599 = vmatmul.msk.f32.gmra.mxu0 %vm605_vm10, %v1199_v14  ;;  %v1230_v41 = vmul.f32 %v1199_v14, %v1199_v14 }
 0x6b6   : > { %v1234_v43 = vsel %vm607_vm11, %v1230_v41, 0.0 }
 0x6b7   : > { %1235 = vadd.xlane.f32.xlu1 %v1234_v43 }
 0x722   : > { %v1233_v44 = vpop.xlane.xlu2 %1232 }
 0x723   : > { %1655 = vrsqrt.f32 %v1233_v44  ;;  %vm1243_vm6 = vweird.f32 %v1233_v44 }
 0x729   : > { %v1656_v45 = vpop.eup %1655  ;;  %v1223_v46 = vpop.f32.mrf.mxu0 }
 0x72a   : > { %v1238_v47 = vmul.f32 %v1656_v45, %v1233_v44  ;;  %v1236_v48 = vpop.xlane.xlu1 %1235  ;;  %vm1244_vm3 = vweird.f32 %v1656_v45 }
 0x72b   : > { %1657 = vrsqrt.f32 %v1236_v48  ;;  %vm1253_vm4 = vweird.f32 %v1236_v48  ;;  %vm1245_vm7 = vmor %vm1243_vm6, %vm1244_vm3 }
 0x72c   : > { %v1239_v49 = vmul.f32 %v1656_v45, %v1238_v47 }
 0x72e   : > { %v1240_v36 = vmul.f32 0.5, %v1239_v49 }
 0x730   : > { %v1241_v40 = vsub.f32 1.5, %v1240_v36 }
 0x731   : > { %v1658_v28 = vpop.eup %1657  ;;  %v1226_v29 = vpop.f32.mrf.mxu0 }
 0x732   : > { %v1248_v37 = vmul.f32 %v1658_v28, %v1236_v48  ;;  %1604 = vmatpush.msk.msra.mxu1 %vm578_vm8, %v1226_v29  ;;  %vm1254_vm2 = vweird.f32 %v1658_v28  ;;  %v1242_v42 = vmul.f32 %v1656_v45, %v1241_v40 }
 0x733   : > { %vm1255_vm5 = vmor %vm1253_vm4, %vm1254_vm2 }
 0x734   : > { %v1249_v51 = vmul.f32 %v1658_v28, %v1248_v37  ;;  %1317 = vmatpush.msra.mxu1 %v1223_v46  ;;  %v1246_v58 = vsel %vm1245_vm7, %v1656_v45, %v1242_v42 }
 0x735   : > { %v1257_v59 = vmul.f32 %v1246_v58, %v1198_v39 }
 0x736   : > { %v1250_v52 = vmul.f32 0.5, %v1249_v51 }
 0x738   : > { %v1251_v53 = vsub.f32 1.5, %v1250_v52 }
 0x73a   : > { %v1252_v55 = vmul.f32 %v1658_v28, %v1251_v53 }
 0x73c   : > { %v1256_v56 = vsel %vm1255_vm5, %v1658_v28, %v1252_v55 }
 0x73d   : > { %v1258_v57 = vmul.f32 %v1256_v56, %v1199_v14 }
 0x73f   : > { %1600 = vmatpush.xpose.msk.msra.mxu2 %vm605_vm10, %v1258_v57 }
 0x743   : > { %1601 = vmatpush.xpose.msk.msra.mxu2 %vm605_vm10, %v1257_v59 }
 0x746   : > { %1602 = vmatmul.msk.f32.vlgmr.msra.gmra.mxu2 %vm605_vm10, %v1257_v59 }
 0x74e   : > { %1603 = vmatmul.msk.f32.gmra.mxu2 %vm605_vm10, %v1258_v57 }
 0x7c9   : > { %v1282_v60 = vpop.f32.mrf.mxu2 }
 0x7ca   : > { %v1288_v61 = vmul.f32 %v1919_v25, %v1282_v60 }
 0x7cc   : > { %1605 = vmatmul.msk.f32.vlgmr.msra.gmra.mxu1 %vm571_vm9, %v1288_v61 }
 0x7d1   : > { %v1285_v63 = vpop.f32.mrf.mxu2 }
 0x7d2   : > { %v1289_v0 = vmul.f32 %v1583_v62, %v1285_v63 }
 0x7d4   : > { %1606 = vmatmul.msk.f32.gmra.mxu1 %vm571_vm9, %v1289_v0 }
 0x849   : > { %v1319_v2 = vpop.f32.mrf.mxu1 }
 0x84a   : > { %v1320_v4 = vadd.f32 %v1634_v1, %v1319_v2 }
 0x84c   : > { %v1325_v5 = vmul.f32 0.999995, %v1320_v4 }
 0x84e   : > { %v1327_v8 = vmax.f32 %v1325_v5, 0.0 }
 0x850   : > { %v1329_v9 = vadd.f32 %v1327_v8, %v1320_v4 }
 0x851   : > { %v1322_v10 = vpop.f32.mrf.mxu1 }
 0x852   : > { %v1331_v16 = vadd.f32 %v1329_v9, %v1967_v50  ;;  %v1323_v25 = vadd.f32 %v1634_v1, %v1322_v10 }
 0x854   : > { %1607 = vst.msk [vmem:[%s1803_s17 + $0x30] sm:$0xff] %vm605_vm10, %v1331_v16  ;;  %v1326_v17 = vmul.f32 0.999995, %v1323_v25  ;;  %1609 = vmatmul.msk.f32.vlgmr.msra.gmra.mxu3 %vm605_vm10, %v1331_v16 }
 0x856   : > { %v1328_v6 = vmax.f32 %v1326_v17, 0.0 }
 0x858   : > { %v1330_v7 = vadd.f32 %v1328_v6, %v1323_v25 }
 0x85a   : > { %v1332_v19 = vadd.f32 %v1330_v7, %v1980_v54 }
 0x85c   : > { %1608 = vst.msk [vmem:[%s1803_s17 + $0x38] sm:$0x3] %vm607_vm11, %v1332_v19  ;;  %1610 = vmatmul.msk.f32.gmra.mxu3 %vm605_vm10, %v1332_v19 }
 0x8d7   : > { %v1359_v20 = vpop.f32.mrf.mxu3 }
 0x8d8   : > { %v1360_v21 = vadd.f32 %v1995_v38, %v1359_v20 }
 0x8da   : > { %1611 = vst.msk [vmem:[%s2002_s28 + $0x10] sm:$0xff] %vm476_vm1, %v1360_v21 }
 0x8df   : > { %v1362_v50 = vpop.f32.mrf.mxu3 }
 0x8e0   : > { %v1363_v22 = vadd.f32 %v1995_v38, %v1362_v50 }
 0x8e2   : > { %1612 = vst.msk [vmem:[%s2002_s28 + $0x18] sm:$0x3] %vm511_vm0, %v1363_v22 }
 0x8e3 PF: > { %s21_s13 = sadd.s32 1, %s1665_s13  }
 0x8e4   : > { %p18_p4 = scmp.ge.s32.totalorder %s21_s13, 4  }
 0x8e6   :  { %20 = sbr.rel (!%p18_p4) target bundleno = 1 (0x1), region = 121 }

</bundles_post_ra>
